<compile_context>
chip_gen: v7x
topology: tpu7x:2x2x1
jax: 0.10.0
libtpu: 0.0.40
codegen_flags: <defaults>
</compile_context>

<pallas_src>
import jax
import jax.numpy as jnp
from jax.experimental import pallas as pl
from jax.experimental.pallas import tpu as pltpu

_LANE = 128
# 4096 rows * 128 lanes * 4 B = 2 MiB per f32 block.  input+output blocks,
# double-buffered => ~8 MiB, safely inside the default scoped VMEM on
# v5e (16 MiB), v6e (32 MiB) and v7x (32 MiB scoped / 64 MiB physical).
_MAX_BLOCK_ROWS = 4096


def _identity_kernel(y_ref, o_ref):
    # The whole forward of g_identity is `return y`: a pure pass-through.
    o_ref[...] = y_ref[...]


def g_identity_forward(y: jax.Array) -> jax.Array:
    """The real optimized forward: identity, zero HBM traffic, no kernel."""
    return y


@jax.jit
def g_identity_forward_pallas(y: jax.Array) -> jax.Array:
    """Explicit Pallas identity copy (fusion-anchor variant).

    Lane-dense reshape + aliased output + tiled 1-D grid for large inputs.
    """
    if y.size > 0 and y.size % _LANE == 0:
        rows = y.size // _LANE
        y2d = y.reshape(rows, _LANE)  # lane-dense: last dim = 128
        if rows <= _MAX_BLOCK_ROWS:
            # Single block == full array dims (satisfies the (8,128) rule);
            # no grid, so nothing to pipeline.
            out2d = pl.pallas_call(
                _identity_kernel,
                out_shape=jax.ShapeDtypeStruct((rows, _LANE), y.dtype),
                in_specs=[pl.BlockSpec((rows, _LANE), lambda: (0, 0))],
                out_specs=pl.BlockSpec((rows, _LANE), lambda: (0, 0)),
                input_output_aliases={0: 0},
            )(y2d)
        else:
            grid = (pl.cdiv(rows, _MAX_BLOCK_ROWS),)
            out2d = pl.pallas_call(
                _identity_kernel,
                out_shape=jax.ShapeDtypeStruct((rows, _LANE), y.dtype),
                grid=grid,
                in_specs=[pl.BlockSpec((_MAX_BLOCK_ROWS, _LANE),
                                       lambda i: (i, 0))],
                out_specs=pl.BlockSpec((_MAX_BLOCK_ROWS, _LANE),
                                       lambda i: (i, 0)),
                input_output_aliases={0: 0},
                compiler_params=pltpu.CompilerParams(
                    dimension_semantics=("parallel",)),
            )(y2d)
        return out2d.reshape(y.shape)

    # Fallback (size not a multiple of 128): whole array as one block.
    return pl.pallas_call(
        _identity_kernel,
        out_shape=jax.ShapeDtypeStruct(y.shape, y.dtype),
        in_specs=[pl.BlockSpec(y.shape, lambda: (0,) * y.ndim)],
        out_specs=pl.BlockSpec(y.shape, lambda: (0,) * y.ndim),
        input_output_aliases={0: 0},
    )(y)


def init_params(key: jax.Array):
    """Deterministic init of the module's (unused) Linear(1, 1, bias=False)
    weight, shape (1, 1); kept only for parity with the PyTorch __init__."""
    w = jax.random.uniform(key, (1, 1), jnp.float32, minval=-1.0, maxval=1.0)
    return {"fc_weight": w}  # never used in forward


if __name__ == "__main__":
    key = jax.random.PRNGKey(0)
    k_param, k_input = jax.random.split(key)

    params = init_params(k_param)  # parameter exists but forward ignores it

    # Small (batch, 16) input consistent with the sibling g_vector module.
    y = jax.random.normal(k_input, (8, 16), dtype=jnp.float32)

    # Preferred path: no kernel at all (the top performance recommendation).
    out_fast = g_identity_forward(y)
    assert out_fast is y

    # Pallas copy path, single lane-dense block (8*16 -> (1, 128)).
    out = jax.block_until_ready(g_identity_forward_pallas(y))
    assert out.shape == y.shape and out.dtype == y.dtype
    assert bool(jnp.all(out == y))

    # Also exercise the tiled (gridded) path with a modest 4 MiB input:
    # rows = 65536*16/128 = 8192 -> two 2 MiB blocks, no partial tiles.
    y_big = jnp.arange(65536 * 16, dtype=jnp.float32).reshape(65536, 16)
    out_big = jax.block_until_ready(g_identity_forward_pallas(y_big))
    assert out_big.shape == y_big.shape and out_big.dtype == y_big.dtype
    assert bool(jnp.all(out_big == y_big))

    print("KERNEL_OK")
</pallas_src>

<mosaic_0001>
module attributes {stable_mosaic.version = 11 : i64} {
  func.func @_identity_kernel(%arg0: memref<1x128xf32, #tpu.memory_space<vmem>>, %arg1: memref<1x128xf32, #tpu.memory_space<vmem>>) attributes {dimension_semantics = [], scalar_prefetch = 0 : i64, scratch_operands = 0 : i64, tpu.core_type = #tpu.core_type<tc>} {
    %c0 = arith.constant 0 : index
    %c0_0 = arith.constant 0 : index
    %0 = vector.load %arg0[%c0, %c0_0] : memref<1x128xf32, #tpu.memory_space<vmem>>, vector<1x128xf32>
    %c0_1 = arith.constant 0 : index
    %c0_2 = arith.constant 0 : index
    %1 = vector.load %arg1[%c0_1, %c0_2] : memref<1x128xf32, #tpu.memory_space<vmem>>, vector<1x128xf32>
    tpu.vector_store %arg1[%c0_1, %c0_2], %0 {strides = array<i32>} : memref<1x128xf32, #tpu.memory_space<vmem>>, vector<1x128xf32>,
    return
  }
}

</mosaic_0001>

<bundles_post_ra>
// kernel: g_identity_forward_pallas.1
= control target key start
LH: loop header
LB: loop body
LE: loop exit
PB: predicated region body
PF: predicated region fallthrough
CT: control target
= control target key end

     0   :  { %s30_s0 = inlined_call_operand.vmem [shape: f32[1,128], index: 0, kind: input, shape index: {}, may-alias: {0,1}]   ;;  %s31_s1 = inlined_call_operand.vmem [shape: f32[1,128], index: 1, kind: output, shape index: {}, may-alias: {0,1}]  }
   0x1   :  { %v8_v0 = vld [vmem:[%s30_s0] sm:$0x1] }
   0x2   :  { %9 = vst [vmem:[%s31_s1] sm:$0x1] %v8_v0 }

</bundles_post_ra>
